<compile_context>
chip_gen: v5e
topology: v5e:2x2
jax: 0.10.0
libtpu: 0.0.40
codegen_flags: <defaults>
</compile_context>

<pallas_src>
import functools

import jax
import jax.numpy as jnp
from jax.experimental import pallas as pl
from jax.experimental.pallas import tpu as pltpu

_CHUNK = 128  # rows processed per inner compute step (one lane-row of targets)


def _round_up(x, m):
    return ((x + m - 1) // m) * m


def _vmem_capacity_bytes():
    try:
        return int(pltpu.get_tpu_info().vmem_capacity_bytes)
    except Exception:
        return 64 * 1024 * 1024  # conservative fallback (v7x physical VMEM)


def _focal_loss_kernel(logits_ref, targets_ref, out_ref, *, alpha, gamma,
                       n_valid, tile_n, needs_mask):
    """One row-tile -> one partial focal-loss sum (written as a lane-dense block)."""
    n_chunks = tile_n // _CHUNK
    c_blk = logits_ref.shape[-1]
    tile_row0 = pl.program_id(0) * tile_n

    # Loop-invariant index helpers (hoisted: JAX does not CSE broadcasts).
    class_ids = jax.lax.broadcasted_iota(jnp.int32, (_CHUNK, c_blk), 1)      # (128, C)
    diag = (jax.lax.broadcasted_iota(jnp.int32, (_CHUNK, _CHUNK), 0)
            == jax.lax.broadcasted_iota(jnp.int32, (_CHUNK, _CHUNK), 1))      # (128, 128)
    if needs_mask:
        sub_iota = jax.lax.broadcasted_iota(jnp.int32, (_CHUNK, 1), 0)        # (128, 1)

    def body(j, acc):
        r0 = pl.multiple_of(j * _CHUNK, _CHUNK)
        logits = logits_ref[pl.ds(r0, _CHUNK), :].astype(jnp.float32)         # (128, C)

        # Targets arrive lane-dense: one 128-wide row per chunk. Relayout to a
        # (128, 1) column via sublane-broadcast + diagonal select (no transpose).
        t_row = targets_ref[:, pl.ds(r0, _CHUNK)]                             # (1, 128)
        tgt = jnp.sum(jnp.where(diag, t_row, 0), axis=1, keepdims=True)       # (128, 1)

        # Numerically stable per-row logsumexp.
        m = jnp.max(logits, axis=-1, keepdims=True)
        lse = m + jnp.log(jnp.sum(jnp.exp(logits - m), axis=-1, keepdims=True))

        # Gather the target-class logit via a one-hot select.
        tgt_logit = jnp.sum(jnp.where(class_ids == tgt, logits, 0.0),
                            axis=-1, keepdims=True)

        ce = jnp.maximum(lse - tgt_logit, 0.0)   # clamp ULP negatives so pt <= 1
        pt = jnp.exp(-ce)
        fm = 1.0 - pt                            # in [0, 1] because ce >= 0

        # Integer-gamma fast path: VALU multiplies instead of exp(g*log(x)) on EUP.
        if isinstance(gamma, int) and not isinstance(gamma, bool) and gamma >= 0:
            w = jnp.ones_like(fm)
            for _ in range(int(gamma)):
                w = w * fm
        else:
            w = fm ** gamma
        focal = alpha * w * ce                                                # (128, 1)

        if needs_mask:  # zero out padded / out-of-range rows of the ragged last tile
            row_ids = tile_row0 + r0 + sub_iota
            focal = jnp.where(row_ids < n_valid, focal, 0.0)

        return acc + jnp.sum(focal, keepdims=True)                            # (1, 1)

    total = jax.lax.fori_loop(0, n_chunks, body, jnp.zeros((1, 1), jnp.float32))
    # Broadcast the tile's partial sum into a full (1, 8, 128) block (unmasked vst).
    out_ref[...] = jnp.broadcast_to(total, out_ref.shape)


def focal_loss(logits, targets, *, alpha=1.0, gamma=2, tile_n=None):
    """Pallas focal loss. logits: (N, C) f32/bf16, targets: (N,) int. Scalar mean."""
    N, C = logits.shape
    dt_bytes = jnp.dtype(logits.dtype).itemsize

    # Targets shipped lane-dense as a single (1, N_pad128) int32 row (tiny copy).
    n_pad128 = _round_up(N, _CHUNK)
    tgt_row = jnp.pad(targets.astype(jnp.int32), (0, n_pad128 - N)).reshape(1, n_pad128)

    # Tiny-batch convenience: pad rows up to one chunk (negligible copy) so the
    # block never exceeds the array. Large N is NEVER padded (ragged last tile).
    n_rows = N
    if N < _CHUNK:
        logits = jnp.pad(logits, ((0, _CHUNK - N), (0, 0)))
        n_rows = _CHUNK

    # --- generation-aware tile sizing ---------------------------------------
    vmem_cap = _vmem_capacity_bytes()
    # ~55% of physical VMEM for the double-buffered input blocks; the rest is
    # headroom for in-kernel chunk temporaries, output blocks and compiler scratch.
    in_budget = min(int(vmem_cap * 0.55), 80 * 1024 * 1024)
    # Per-row VMEM cost per buffer: logits (lanes padded to 128) + lane-dense targets.
    row_bytes = _round_up(C, 128) * dt_bytes + 8 * 4
    if tile_n is None:
        cap_rows = in_budget // (2 * row_bytes)          # 2 = double buffering
        tile_n = min(cap_rows, _round_up(n_rows, _CHUNK))
    tile_n = max(_CHUNK, (int(tile_n) // _CHUNK) * _CHUNK)

    num_tiles = pl.cdiv(n_rows, tile_n)
    needs_mask = (N % tile_n) != 0

    cost = pl.CostEstimate(
        flops=8 * N * C,
        transcendentals=N * (C + 2),
        bytes_accessed=N * C * dt_bytes + n_pad128 * 4 + num_tiles * 8 * 128 * 4,
    )

    partials = pl.pallas_call(
        functools.partial(
            _focal_loss_kernel,
            alpha=float(alpha), gamma=gamma,
            n_valid=N, tile_n=tile_n, needs_mask=needs_mask),
        out_shape=jax.ShapeDtypeStruct((num_tiles, 8, 128), jnp.float32),
        grid_spec=pltpu.PrefetchScalarGridSpec(
            num_scalar_prefetch=0,
            grid=(num_tiles,),
            in_specs=[
                pl.BlockSpec((tile_n, C), lambda i: (i, 0)),
                pl.BlockSpec((1, tile_n), lambda i: (0, i)),
            ],
            # Each tile writes its own (8,128)-aligned block -> parallel grid.
            out_specs=pl.BlockSpec((1, 8, 128), lambda i: (i, 0, 0)),
        ),
        compiler_params=pltpu.CompilerParams(
            dimension_semantics=("parallel",),
            vmem_limit_bytes=int(min(vmem_cap * 0.9, 100 * 1024 * 1024)),
        ),
        cost_estimate=cost,
    )(logits, tgt_row)

    # All 1024 entries of each partial block are identical (broadcast fill):
    # dense, fully coalesced sum instead of a strided [:, 0, 0] gather.
    total = jnp.sum(partials) * (1.0 / (8.0 * 128.0))
    return total / N                              # mean reduction


def _reference_focal_loss(logits, targets, alpha=1.0, gamma=2):
    """Pure-JAX reference mirroring the PyTorch module."""
    logp = jax.nn.log_softmax(logits, axis=-1)
    ce = -jnp.take_along_axis(logp, targets[:, None].astype(jnp.int32), axis=-1)[:, 0]
    pt = jnp.exp(-ce)
    return jnp.mean(alpha * (1.0 - pt) ** gamma * ce)


if __name__ == "__main__":
    key = jax.random.PRNGKey(0)
    k1, k2 = jax.random.split(key)

    # Small shapes consistent with an NER classification head: 16 tokens, 32 labels.
    N, C = 16, 32
    logits = jax.random.normal(k1, (N, C), dtype=jnp.float32)
    targets = jax.random.randint(k2, (N,), 0, C, dtype=jnp.int32)

    out = jax.block_until_ready(focal_loss(logits, targets, alpha=1.0, gamma=2))
    ref = _reference_focal_loss(logits, targets, alpha=1.0, gamma=2)
    assert jnp.allclose(out, ref, rtol=1e-5, atol=1e-5), (out, ref)

    # Ragged / multi-tile path: N not a multiple of the tile, forced small tile.
    N2, C2 = 300, 32
    logits2 = jax.random.normal(k1, (N2, C2), dtype=jnp.float32)
    targets2 = jax.random.randint(k2, (N2,), 0, C2, dtype=jnp.int32)
    out2 = jax.block_until_ready(focal_loss(logits2, targets2, tile_n=128))
    ref2 = _reference_focal_loss(logits2, targets2)
    assert jnp.allclose(out2, ref2, rtol=1e-5, atol=1e-5), (out2, ref2)

    # bf16 ingestion path (no wrapper upcast; cast happens per chunk in-kernel).
    logits3 = logits2.astype(jnp.bfloat16)
    out3 = jax.block_until_ready(focal_loss(logits3, targets2, tile_n=128))
    ref3 = _reference_focal_loss(logits3.astype(jnp.float32), targets2)
    assert jnp.allclose(out3, ref3, rtol=1e-5, atol=1e-5), (out3, ref3)

    print("KERNEL_OK")
</pallas_src>

<mosaic_0001>
module attributes {stable_mosaic.version = 11 : i64} {
  func.func @_focal_loss_kernel(%arg0: i32, %arg1: memref<128x32xf32, #tpu.memory_space<vmem>>, %arg2: memref<1x128xi32, #tpu.memory_space<vmem>>, %arg3: memref<1x8x128xf32, #tpu.memory_space<vmem>>) attributes {dimension_semantics = [#tpu.dimension_semantics<parallel>], iteration_bounds = array<i64: 1>, scalar_prefetch = 0 : i64, scratch_operands = 0 : i64, tpu.core_type = #tpu.core_type<tc>, window_params = [{transform_indices = @transform_0, window_bounds = array<i64: 128, 32>}, {transform_indices = @transform_1, window_bounds = array<i64: 1, 128>}, {transform_indices = @transform_2, window_bounds = array<i64: 1, 8, 128>}]} {
    %c128_i32 = arith.constant 128 : i32
    %0 = arith.muli %arg0, %c128_i32 : i32
    %1 = tpu.iota {dimensions = array<i32: 1>} : vector<128x32xi32>
    %2 = tpu.iota {dimensions = array<i32: 0>} : vector<128x128xi32>
    %3 = tpu.iota {dimensions = array<i32: 1>} : vector<128x128xi32>
    %4 = arith.cmpi eq, %2, %3 : vector<128x128xi32>
    %5 = tpu.iota {dimensions = array<i32: 0>} : vector<128x1xi32>
    %cst = arith.constant 0.000000e+00 : f32
    %6 = vector.broadcast %cst : f32 to vector<1x1xf32>
    %c0_i32 = arith.constant 0 : i32
    %c128_i32_0 = arith.constant 128 : i32
    %7 = arith.muli %c0_i32, %c128_i32_0 : i32
    %8 = tpu.assume_multiple %7, 128 : i32
    %9 = arith.index_cast %8 : i32 to index
    %c0 = arith.constant 0 : index
    %10 = vector.load %arg1[%9, %c0] : memref<128x32xf32, #tpu.memory_space<vmem>>, vector<128x32xf32>
    %c0_1 = arith.constant 0 : index
    %11 = arith.index_cast %8 : i32 to index
    %12 = vector.load %arg2[%c0_1, %11] : memref<1x128xi32, #tpu.memory_space<vmem>>, vector<1x128xi32>
    %c0_i32_2 = arith.constant 0 : i32
    %13 = vector.shape_cast %12 : vector<1x128xi32> to vector<1x128xi32>
    %14 = vector.broadcast %13 : vector<1x128xi32> to vector<128x128xi32>
    %15 = vector.broadcast %c0_i32_2 : i32 to vector<128x128xi32>
    %16 = arith.select %4, %14, %15 : vector<128x128xi1>, vector<128x128xi32>
    %cst_3 = arith.constant dense<0> : vector<128xi32>
    %17 = vector.multi_reduction <add>, %16, %cst_3 [1] : vector<128x128xi32> to vector<128xi32>
    %18 = vector.shape_cast %17 : vector<128xi32> to vector<128x1xi32>
    %cst_4 = arith.constant dense<0xFF800000> : vector<128xf32>
    %19 = vector.multi_reduction <maximumf>, %10, %cst_4 [1] : vector<128x32xf32> to vector<128xf32>
    %20 = vector.shape_cast %19 : vector<128xf32> to vector<128x1xf32>
    %21 = vector.broadcast %20 : vector<128x1xf32> to vector<128x32xf32>
    %22 = arith.subf %10, %21 : vector<128x32xf32>
    %23 = math.exp %22 : vector<128x32xf32>
    %cst_5 = arith.constant dense<0.000000e+00> : vector<128xf32>
    %24 = vector.multi_reduction <add>, %23, %cst_5 [1] : vector<128x32xf32> to vector<128xf32>
    %25 = vector.shape_cast %24 : vector<128xf32> to vector<128x1xf32>
    %26 = math.log %25 : vector<128x1xf32>
    %27 = arith.addf %20, %26 : vector<128x1xf32>
    %28 = vector.broadcast %18 : vector<128x1xi32> to vector<128x32xi32>
    %29 = arith.cmpi eq, %1, %28 : vector<128x32xi32>
    %cst_6 = arith.constant 0.000000e+00 : f32
    %30 = vector.broadcast %cst_6 : f32 to vector<128x32xf32>
    %31 = arith.select %29, %10, %30 : vector<128x32xi1>, vector<128x32xf32>
    %cst_7 = arith.constant dense<0.000000e+00> : vector<128xf32>
    %32 = vector.multi_reduction <add>, %31, %cst_7 [1] : vector<128x32xf32> to vector<128xf32>
    %33 = vector.shape_cast %32 : vector<128xf32> to vector<128x1xf32>
    %34 = arith.subf %27, %33 : vector<128x1xf32>
    %cst_8 = arith.constant 0.000000e+00 : f32
    %35 = vector.broadcast %cst_8 : f32 to vector<128x1xf32>
    %36 = arith.maximumf %34, %35 : vector<128x1xf32>
    %cst_9 = arith.constant 0.000000e+00 : f32
    %37 = vector.broadcast %cst_9 : f32 to vector<128x1xf32>
    %38 = arith.subf %37, %36 : vector<128x1xf32>
    %39 = math.exp %38 : vector<128x1xf32>
    %cst_10 = arith.constant 1.000000e+00 : f32
    %40 = vector.broadcast %cst_10 : f32 to vector<128x1xf32>
    %41 = arith.subf %40, %39 : vector<128x1xf32>
    %cst_11 = arith.constant 1.000000e+00 : f32
    %42 = vector.broadcast %cst_11 : f32 to vector<128x1xf32>
    %43 = arith.mulf %42, %41 : vector<128x1xf32>
    %44 = arith.mulf %43, %41 : vector<128x1xf32>
    %cst_12 = arith.constant 1.000000e+00 : f32
    %45 = vector.broadcast %cst_12 : f32 to vector<128x1xf32>
    %46 = arith.mulf %45, %44 : vector<128x1xf32>
    %47 = arith.mulf %46, %36 : vector<128x1xf32>
    %48 = arith.addi %0, %8 : i32
    %49 = vector.broadcast %48 : i32 to vector<128x1xi32>
    %50 = arith.addi %49, %5 : vector<128x1xi32>
    %c16_i32 = arith.constant 16 : i32
    %51 = vector.broadcast %c16_i32 : i32 to vector<128x1xi32>
    %52 = arith.cmpi slt, %50, %51 : vector<128x1xi32>
    %cst_13 = arith.constant 0.000000e+00 : f32
    %53 = vector.broadcast %cst_13 : f32 to vector<128x1xf32>
    %54 = arith.select %52, %47, %53 : vector<128x1xi1>, vector<128x1xf32>
    %55 = vector.shape_cast %54 : vector<128x1xf32> to vector<1x128x1xf32>
    %cst_14 = arith.constant dense<0.000000e+00> : vector<1xf32>
    %56 = vector.multi_reduction <add>, %55, %cst_14 [1, 2] : vector<1x128x1xf32> to vector<1xf32>
    %57 = vector.shape_cast %56 : vector<1xf32> to vector<1x1x1xf32>
    %58 = vector.extract %57[0, 0, 0] : f32 from vector<1x1x1xf32>
    %59 = vector.broadcast %58 : f32 to vector<1x1xf32>
    %60 = arith.addf %6, %59 : vector<1x1xf32>
    %c1_i32 = arith.constant 1 : i32
    %61 = vector.shape_cast %60 : vector<1x1xf32> to vector<1x1x1xf32>
    %62 = vector.broadcast %61 : vector<1x1x1xf32> to vector<1x8x128xf32>
    %c0_15 = arith.constant 0 : index
    %c0_16 = arith.constant 0 : index
    %c0_17 = arith.constant 0 : index
    %63 = vector.load %arg3[%c0_15, %c0_16, %c0_17] : memref<1x8x128xf32, #tpu.memory_space<vmem>>, vector<1x8x128xf32>
    tpu.vector_store %arg3[%c0_15, %c0_16, %c0_17], %62 {strides = array<i32>} : memref<1x8x128xf32, #tpu.memory_space<vmem>>, vector<1x8x128xf32>,
    return
  }
  func.func @transform_0(%arg0: i32) -> (i32, i32) {
    %c0_i32 = arith.constant 0 : i32
    %c0_i32_0 = arith.constant 0 : i32
    return %arg0, %c0_i32 : i32, i32
  }
  func.func @transform_1(%arg0: i32) -> (i32, i32) {
    %c0_i32 = arith.constant 0 : i32
    %c0_i32_0 = arith.constant 0 : i32
    return %c0_i32, %arg0 : i32, i32
  }
  func.func @transform_2(%arg0: i32) -> (i32, i32, i32) {
    %c0_i32 = arith.constant 0 : i32
    %c0_i32_0 = arith.constant 0 : i32
    %c0_i32_1 = arith.constant 0 : i32
    return %arg0, %c0_i32, %c0_i32_0 : i32, i32, i32
  }
}

</mosaic_0001>

<bundles_post_ra>
// kernel: tpu_custom_call.1
= control target key start
LH: loop header
LB: loop body
LE: loop exit
PB: predicated region body
PF: predicated region fallthrough
CT: control target
= control target key end

     0   :  { %vm274_vm0 = vcmask 261120   ;;  %v13_v1 = vlaneseq  ;;  %s861_s0 = inlined_call_operand.vmem [shape: f32[128,32], index: 0, kind: input, shape index: {}]   ;;  %s862_s1 = inlined_call_operand.vmem [shape: s32[1,128], index: 1, kind: input, shape index: {}]   ;;  %s863_s2 = inlined_call_operand.hbm [shape: f32[1,8,128], index: 2, kind: output, shape index: {}]  }
   0x1   :  { %v48_v0 = vld [vmem:[%s861_s0] sm:$0xff] }
   0x2   :  { %v275_v2 = vsel %vm274_vm0, %v48_v0, -inf  ;;  %v788_v3 = vld [vmem:[%s862_s1] ss:$0 sm:$0xff] }
   0x3   :  { %7 = vsyncpa [#allocation3], 0  ;;  %276 = vmax.xlane.f32.xlu0 %v275_v2  ;;  %v14_v4 = vand.u32 127, %v13_v1  ;;  %v16_v5 = vshrl.u32 %v13_v1, 7  ;;  %v49_v6 = vld [vmem:[%s861_s0 + $0x8] sm:$0xff]  ;;  %vm725_vm5 = vcmask 7168  }
   0x4   :  { %v278_v11 = vsel %vm274_vm0, %v49_v6, -inf  ;;  %s827_s0 = smov [#allocation2]   ;;  %s776_s17 = sshll.u32 %s863_s2, 4  ;;  %s777_s17 = int_to_ptr.hbm [resolvable:$true] %s776_s17 }
   0x5   :  { %vm32_vm1 = vcmp.eq.s32.totalorder %v16_v5, %v14_v4  ;;  %v17_v7 = vadd.s32 8, %v16_v5  ;;  %s774_s1 = sshll.u32 %s827_s0, 4  ;;  %s775_s1 = int_to_ptr.vmem [resolvable:$true] %s774_s1 }
   0x6   :  { %v66_v8 = vsel %vm32_vm1, %v788_v3, 0 }
   0x7   :  { %v83_v9 = vshrl.u32 %v66_v8, 16  ;;  %v82_v10 = vand.u32 65535, %v66_v8  ;;  %vm33_vm2 = vcmp.eq.s32.totalorder %v17_v7, %v14_v4 }
   0x8   :  { %v67_v12 = vsel %vm33_vm2, %v788_v3, 0 }
   0x9   :  { %v85_v13 = vcvt.s32.f32 %v83_v9  ;;  %v84_v14 = vcvt.s32.f32 %v82_v10  ;;  %v95_v15 = vshrl.u32 %v67_v12, 16  ;;  %v94_v16 = vand.u32 65535, %v67_v12 }
   0xb   :  { %279 = vmax.xlane.f32.xlu0 %v278_v11  ;;  %88 = vadd.xlane.f32.xlu1 %v85_v13  ;;  %v97_v17 = vcvt.s32.f32 %v95_v15  ;;  %v96_v18 = vcvt.s32.f32 %v94_v16 }
   0xc   :  { %86 = vadd.xlane.f32.xlu2 %v84_v14 }
  0x13   :  { %100 = vadd.xlane.f32.xlu1 %v97_v17 }
  0x14   :  { %98 = vadd.xlane.f32.xlu2 %v96_v18 }
  0x76   :  { %v277_v19 = vpop.xlane.xlu0 %276 }
  0x77   :  { %v323_v20 = vsub.f32 %v48_v0, %v277_v19 }
  0x79   :  { %v339_v21 = vmul.f32 1.442695, %v323_v20 }
  0x7b   :  { %789 = vpow2.f32 %v339_v21 }
  0x7e   :  { %v280_v22 = vpop.xlane.xlu0 %279  ;;  %v89_v23 = vpop.xlane.xlu1 %88 }
  0x7f   :  { %v324_v24 = vsub.f32 %v49_v6, %v280_v22  ;;  %v91_v25 = vcvt.f32.s32 %v89_v23  ;;  %v87_v26 = vpop.xlane.xlu2 %86 }
  0x80   :  { %v90_v27 = vcvt.f32.s32 %v87_v26 }
  0x81   :  { %v790_v28 = vpop.eup %789  ;;  %v341_v29 = vmul.f32 1.442695, %v324_v24  ;;  %v92_v30 = vshll.u32 %v91_v25, 16 }
  0x82   :  { %v371_v31 = vsel %vm274_vm0, %v790_v28, 0.0 }
  0x83   :  { %791 = vpow2.f32 %v341_v29  ;;  %372 = vadd.xlane.f32.xlu0 %v371_v31  ;;  %v93_v32 = vadd.s32 %v92_v30, %v90_v27 }
  0x85   :  { %vm467_vm3 = vcmp.eq.s32.totalorder %v14_v4, %v93_v32 }
  0x86   :  { %v101_v33 = vpop.xlane.xlu1 %100  ;;  %v483_v34 = vsel %vm467_vm3, %v48_v0, 0.0 }
  0x87   :  { %v103_v35 = vcvt.f32.s32 %v101_v33  ;;  %v499_v36 = vsel %vm274_vm0, %v483_v34, 0.0  ;;  %v99_v37 = vpop.xlane.xlu2 %98 }
  0x88   :  { %500 = vadd.xlane.f32.xlu2 %v499_v36  ;;  %v102_v38 = vcvt.f32.s32 %v99_v37 }
  0x89   :  { %v792_v39 = vpop.eup %791  ;;  %v104_v40 = vshll.u32 %v103_v35, 16 }
  0x8a   :  { %v374_v41 = vsel %vm274_vm0, %v792_v39, 0.0 }
  0x8b   :  { %375 = vadd.xlane.f32.xlu1 %v374_v41  ;;  %v105_v42 = vadd.s32 %v104_v40, %v102_v38 }
  0x8d   :  { %vm468_vm4 = vcmp.eq.s32.totalorder %v14_v4, %v105_v42 }
  0x8e   :  { %v484_v43 = vsel %vm468_vm4, %v49_v6, 0.0 }
  0x8f   :  { %v502_v44 = vsel %vm274_vm0, %v484_v43, 0.0 }
  0x90   :  { %503 = vadd.xlane.f32.xlu0 %v502_v44 }
  0xf6   :  { %v373_v45 = vpop.xlane.xlu0 %372 }
  0xf7   :  { %793 = vlog2.f32 %v373_v45 }
  0xfb   :  { %v501_v49 = vpop.xlane.xlu2 %500 }
  0xfd   :  { %v794_v46 = vpop.eup %793 }
  0xfe   :  { %v420_v47 = vmul.f32 0.6931472, %v794_v46  ;;  %v376_v48 = vpop.xlane.xlu1 %375 }
  0xff   :  { %795 = vlog2.f32 %v376_v48 }
 0x100   :  { %v451_v50 = vadd.f32 %v420_v47, %v277_v19 }
 0x102   :  { %v547_v51 = vsub.f32 %v451_v50, %v501_v49 }
 0x103   :  { %v504_v56 = vpop.xlane.xlu0 %503 }
 0x104   :  { %v563_v52 = vmax.f32 %v547_v51, 0.0 }
 0x105   :  { %v796_v53 = vpop.eup %795 }
 0x106   :  { %v422_v54 = vmul.f32 0.6931472, %v796_v53  ;;  %v579_v55 = vsub.f32 0.0, %v563_v52 }
 0x108   :  { %v595_v57 = vmul.f32 1.442695, %v579_v55  ;;  %v452_v58 = vadd.f32 %v422_v54, %v280_v22 }
 0x10a   :  { %797 = vpow2.f32 %v595_v57  ;;  %v548_v59 = vsub.f32 %v452_v58, %v504_v56 }
 0x10c   :  { %v564_v60 = vmax.f32 %v548_v59, 0.0 }
 0x10e   :  { %v580_v61 = vsub.f32 0.0, %v564_v60 }
 0x110   :  { %v798_v62 = vpop.eup %797  ;;  %v597_v63 = vmul.f32 1.442695, %v580_v61 }
 0x111   :  { %v627_v0 = vsub.f32 1.0, %v798_v62 }
 0x112   :  { %799 = vpow2.f32 %v597_v63 }
 0x113   :  { %v643_v1 = vmul.f32 %v627_v0, %v627_v0 }
 0x115   :  { %v659_v4 = vmul.f32 %v643_v1, %v563_v52 }
 0x117   :  { %v726_v7 = vsel %vm725_vm5, %v659_v4, 0.0 }
 0x118   :  { %v800_v2 = vpop.eup %799 }
 0x119   :  { %v628_v3 = vsub.f32 1.0, %v800_v2 }
 0x11b   :  { %v644_v5 = vmul.f32 %v628_v3, %v628_v3 }
 0x11d   :  { %v660_v6 = vmul.f32 %v644_v5, %v564_v60 }
 0x11f   :  { %v727_v8 = vsel %vm725_vm5, %v660_v6, 0.0 }
 0x120   :  { %v728_v9 = vadd.f32 %v727_v8, %v726_v7 }
 0x122   :  { %757 = vadd.xlane.f32.xlu1 %v728_v9 }
 0x195   :  { %v758_v10 = vpop.xlane.xlu1 %757 }
 0x196   :  { %v759_v11 = vrot.slane %v758_v10, 4 }
 0x198   :  { %v760_v12 = vadd.f32 %v759_v11, %v758_v10 }
 0x19a   :  { %v761_v13 = vrot.slane %v760_v12, 2 }
 0x19c   :  { %v762_v14 = vadd.f32 %v761_v13, %v760_v12 }
 0x19e   :  { %v763_v15 = vrot.slane %v762_v14, 1 }
 0x1a0   :  { %v764_v16 = vadd.f32 %v763_v15, %v762_v14 }
 0x1a2   :  { %785 = vpush %v764_v16 }
 0x1d3   :  { %s786_s18 = spop %785 }
 0x1d4   :  { %v766_v17 = vstv %s786_s18 }
 0x1d5   :  { %768 = vst [vmem:[#allocation2] sm:$0xff] %v766_v17 }
 0x1d6   :  { %779 = dma.vmem_to_hbm [thread:$0]  %s775_s1, 128, %s777_s17, [#allocation3]  }
 0x1d7   :  { %825 = dma.done.wait [#allocation3], 128  }
 0x1d8   :  { %826 = vsyncadd [#allocation3], 4294967168 }
 0x1d9   :  { %784 = vsyncpa [#allocation3], 1 }

</bundles_post_ra>
